<compile_context>
chip_gen: v5e
topology: v5e:2x2
jax: 0.10.0
libtpu: 0.0.40
codegen_flags: <defaults>
</compile_context>

<pallas_src>
import math

import jax
import jax.numpy as jnp
from jax.experimental import pallas as pl
from jax.experimental.pallas import tpu as pltpu

_MAX_LANES = 1024            # widest lane view we bother with
_TARGET_TILE_BYTES = 2 << 20  # ~2 MiB per tile (per buffer)


# ------------------------------- kernel -------------------------------------
def scale_kernel(x_ref, s_ref, o_ref):
    # x_ref: (block_rows, lanes), s_ref: (1, lanes) -> VPU broadcast multiply.
    o_ref[...] = (x_ref[...] * s_ref[...]).astype(o_ref.dtype)


# ----------------------------- layout helpers -------------------------------
def _choose_lanes(total, features):
    """Pick a lane width that is a multiple of 128 and of `features`,
    divides `total`, and is as wide as reasonable (unmasked full-width vst)."""
    if features % 128 == 0:
        base = features                      # already lane-dense
    else:
        base = features * 128 // math.gcd(features, 128)   # lcm(features, 128)
        if total % base != 0:
            return features                  # fallback: natural layout
    lanes = base
    while lanes * 2 <= _MAX_LANES and total % (lanes * 2) == 0:
        lanes *= 2
    return lanes


def _choose_block_rows(rows, lanes, itemsize):
    """Rows per tile: ~2 MiB tiles, sublane dim a multiple of 8/16/32."""
    sub = max(8, 32 // itemsize)             # 8 (f32), 16 (bf16), 32 (int8)
    if rows <= sub:
        return rows                          # full-extent block is always legal
    target = max(sub, _TARGET_TILE_BYTES // (lanes * itemsize))
    block_rows = min(rows, (target // sub) * sub)
    return max(sub, block_rows)


# ------------------------------- wrapper ------------------------------------
def scale_layer(x, scale):
    """Pallas equivalent of PyTorch ScaleLayer.forward: x * scale.

    `scale` has shape (features,) and broadcasts against x's last dim,
    exactly like the PyTorch module.
    """
    features = scale.shape[0]
    assert x.shape[-1] == features, (x.shape, scale.shape)
    orig_shape = x.shape
    total = x.size
    scale = scale.astype(x.dtype)            # keep the multiply in x's dtype

    lanes = _choose_lanes(total, features)
    if lanes % features == 0 and total % lanes == 0:
        # Lane-dense view: lane index l in a row maps to feature l % features
        # (because lanes % features == 0), so one pre-tiled scale row is exact.
        x2 = x.reshape(total // lanes, lanes)
        s2 = jnp.tile(scale, lanes // features).reshape(1, lanes)
    else:
        # Fallback: natural (batch-flattened, features) layout.
        x2 = x.reshape(-1, features)
        s2 = scale.reshape(1, features)
        lanes = features

    rows = x2.shape[0]
    block_rows = _choose_block_rows(rows, lanes, x.dtype.itemsize)
    grid = (pl.cdiv(rows, block_rows),)

    out = pl.pallas_call(
        scale_kernel,
        out_shape=jax.ShapeDtypeStruct(x2.shape, x.dtype),
        grid=grid,
        in_specs=[
            pl.BlockSpec((block_rows, lanes), lambda i: (i, 0)),
            pl.BlockSpec((1, lanes), lambda i: (0, 0)),   # scale stays resident
        ],
        out_specs=pl.BlockSpec((block_rows, lanes), lambda i: (i, 0)),
        compiler_params=pltpu.CompilerParams(
            dimension_semantics=("parallel",)),
        cost_estimate=pl.CostEstimate(
            flops=total,
            transcendentals=0,
            bytes_accessed=2 * x2.size * x.dtype.itemsize
            + s2.size * x.dtype.itemsize),
    )(x2, s2)
    return out.reshape(orig_shape)


# --------------------------------- main --------------------------------------
if __name__ == "__main__":
    key = jax.random.PRNGKey(0)
    kx, ks = jax.random.split(key)

    # Small shapes consistent with the module: batch=2, channels=4, 16x16
    # spatial, features = last dim = 16.
    x = jax.random.normal(kx, (2, 4, 16, 16), dtype=jnp.float32)
    scale = 1.0 + 0.1 * jax.random.normal(ks, (16,), dtype=jnp.float32)

    out = jax.jit(scale_layer)(x, scale)
    out = jax.block_until_ready(out)
    assert out.shape == x.shape, out.shape

    ref = x * scale  # PyTorch ScaleLayer semantics (broadcast over last dim)
    assert jnp.allclose(out, ref, rtol=1e-6, atol=1e-6), \
        float(jnp.max(jnp.abs(out - ref)))

    print("KERNEL_OK")
</pallas_src>

<mosaic_0001>
module attributes {stable_mosaic.version = 11 : i64} {
  func.func @scale_kernel(%arg0: i32, %arg1: memref<2x1024xf32, #tpu.memory_space<vmem>>, %arg2: memref<1x1024xf32, #tpu.memory_space<vmem>>, %arg3: memref<2x1024xf32, #tpu.memory_space<vmem>>) attributes {dimension_semantics = [#tpu.dimension_semantics<parallel>], iteration_bounds = array<i64: 1>, scalar_prefetch = 0 : i64, scratch_operands = 0 : i64, tpu.core_type = #tpu.core_type<tc>, window_params = [{transform_indices = @transform_0, window_bounds = array<i64: 2, 1024>}, {pipeline_mode = #tpu.pipeline_mode<synchronous>, transform_indices = @transform_1, window_bounds = array<i64: 1, 1024>}, {transform_indices = @transform_2, window_bounds = array<i64: 2, 1024>}]} {
    %c0 = arith.constant 0 : index
    %c0_0 = arith.constant 0 : index
    %0 = vector.load %arg1[%c0, %c0_0] : memref<2x1024xf32, #tpu.memory_space<vmem>>, vector<2x1024xf32>
    %c0_1 = arith.constant 0 : index
    %c0_2 = arith.constant 0 : index
    %1 = vector.load %arg2[%c0_1, %c0_2] : memref<1x1024xf32, #tpu.memory_space<vmem>>, vector<1x1024xf32>
    %2 = vector.broadcast %1 : vector<1x1024xf32> to vector<2x1024xf32>
    %3 = arith.mulf %0, %2 : vector<2x1024xf32>
    %c0_3 = arith.constant 0 : index
    %c0_4 = arith.constant 0 : index
    %4 = vector.load %arg3[%c0_3, %c0_4] : memref<2x1024xf32, #tpu.memory_space<vmem>>, vector<2x1024xf32>
    tpu.vector_store %arg3[%c0_3, %c0_4], %3 {strides = array<i32>} : memref<2x1024xf32, #tpu.memory_space<vmem>>, vector<2x1024xf32>,
    return
  }
  func.func @transform_0(%arg0: i32) -> (i32, i32) {
    %c0_i32 = arith.constant 0 : i32
    %c0_i32_0 = arith.constant 0 : i32
    return %arg0, %c0_i32 : i32, i32
  }
  func.func @transform_1(%arg0: i32) -> (i32, i32) {
    %c0_i32 = arith.constant 0 : i32
    %c0_i32_0 = arith.constant 0 : i32
    %c0_i32_1 = arith.constant 0 : i32
    return %c0_i32, %c0_i32_0 : i32, i32
  }
  func.func @transform_2(%arg0: i32) -> (i32, i32) {
    %c0_i32 = arith.constant 0 : i32
    %c0_i32_0 = arith.constant 0 : i32
    return %arg0, %c0_i32 : i32, i32
  }
}

</mosaic_0001>

<bundles_post_ra>
// kernel: tile.9
= control target key start
LH: loop header
LB: loop body
LE: loop exit
PB: predicated region body
PF: predicated region fallthrough
CT: control target
= control target key end

     0   :  { %vm4_vm0 = vcmask 1047556   ;;  %s162_s14 = smov 112   ;;  %s163_s15 = smov 80   ;;  %vm6_vm1 = vcmask 130048   ;;  %vm17_vm2 = vcmask 1048448   ;;  %vm28_vm3 = vcmask 917248   ;;  %s259_s0 = inlined_call_operand.vmem [shape: f32[64,16], index: 0, kind: input, shape index: {}]   ;;  %s260_s1 = inlined_call_operand.vmem [shape: f32[1,1024], index: 1, kind: output, shape index: {}]  }
   0x1   :  { %v134_v0 = vld [vmem:[%s259_s0 + $0x7] ss:$8 sm:$0xf]   ;;  %v138_v2 = vld [vmem:[%s259_s0 + $0x5] ss:$8 sm:$0xf]  }
   0x2   :  { %v135_v1 = vld [vmem:[%s259_s0 + $0x7] ss:$8 sm:$0xf0]   ;;  %v139_v4 = vld [vmem:[%s259_s0 + $0x5] ss:$8 sm:$0xf0]  }
   0x3   :  { %v14_v3 = vsel %vm4_vm0, %v135_v1, %v134_v0  ;;  %v36_v5 = vsel %vm4_vm0, %v139_v4, %v138_v2  ;;  %v136_v6 = vld [vmem:[%s259_s0 + $0x6] ss:$8 sm:$0xf]   ;;  %v140_v8 = vld [vmem:[%s259_s0 + $0x4] ss:$8 sm:$0xf]  }
   0x4   :  { %15 = vrot.lane.b32.xlu0 %v14_v3, %s162_s14  ;;  %37 = vrot.lane.b32.xlu1 %v36_v5, %s163_s15  ;;  %v137_v7 = vld [vmem:[%s259_s0 + $0x6] ss:$8 sm:$0xf0]   ;;  %v141_v9 = vld [vmem:[%s259_s0 + $0x4] ss:$8 sm:$0xf0]  }
   0x5   :  { %v142_v10 = vld [vmem:[%s259_s0 + $0x3] ss:$8 sm:$0xf]   ;;  %v25_v12 = vsel %vm4_vm0, %v137_v7, %v136_v6  ;;  %v47_v14 = vsel %vm4_vm0, %v141_v9, %v140_v8  ;;  %s164_s28 = smov 48   ;;  %s165_s29 = smov 96   ;;  %vm39_vm4 = vcmask 786048  }
   0x6   :  { %v143_v11 = vld [vmem:[%s259_s0 + $0x3] ss:$8 sm:$0xf0]   ;;  %v144_v15 = vld [vmem:[%s259_s0 + $0x2] ss:$8 sm:$0xf]  }
   0x7   :  { %v58_v13 = vsel %vm4_vm0, %v143_v11, %v142_v10  ;;  %v145_v16 = vld [vmem:[%s259_s0 + $0x2] ss:$8 sm:$0xf0]   ;;  %s166_s5 = smov 64   ;;  %s167_s10 = smov 32   ;;  %vm50_vm5 = vcmask 654848  }
   0x8   :  { %59 = vrot.lane.b32.xlu2 %v58_v13, %s164_s28  ;;  %v146_v17 = vld [vmem:[%s259_s0 + $0x1] ss:$8 sm:$0xf]   ;;  %v69_v19 = vsel %vm4_vm0, %v145_v16, %v144_v15  ;;  %s168_s11 = smov 16   ;;  %vm61_vm6 = vcmask 523648   ;;  %vm72_vm7 = vcmask 392448  }
   0x9   :  { %v147_v18 = vld [vmem:[%s259_s0 + $0x1] ss:$8 sm:$0xf0]   ;;  %v2_v21 = vld [vmem:[%s259_s0] ss:$8 sm:$0xf]  }
   0xa   :  { %v80_v20 = vsel %vm4_vm0, %v147_v18, %v146_v17  ;;  %v3_v22 = vld [vmem:[%s259_s0] ss:$8 sm:$0xf0]   ;;  %vm83_vm8 = vcmask 261248  }
   0xb   :  { %v5_v23 = vsel %vm4_vm0, %v3_v22, %v2_v21 }
   0xc   :  { %26 = vrot.lane.b32.xlu0 %v25_v12, %s165_s29  ;;  %48 = vrot.lane.b32.xlu1 %v47_v14, %s166_s5  ;;  %7 = vst.msk [vmem:[#allocation0] ss:$8 sm:$0xf] %vm6_vm1, %v5_v23  }
   0xd   :  { %8 = vst.msk [vmem:[#allocation0] ss:$8 sm:$0xf0] %vm6_vm1, %v5_v23  }
  0x10   :  { %70 = vrot.lane.b32.xlu2 %v69_v19, %s167_s10 }
  0x14   :  { %81 = vrot.lane.b32.xlu0 %v80_v20, %s168_s11 }
  0x62   :  { %v60_v24 = vpop.permute.xlu2 %59  }
  0x6a   :  { %v71_v25 = vpop.permute.xlu2 %70  }
  0x76   :  { %v16_v26 = vpop.permute.xlu0 %15   ;;  %v38_v27 = vpop.permute.xlu1 %37  }
  0x77   :  { %18 = vst.msk [vmem:[#allocation0] ss:$8 sm:$0xf] %vm17_vm2, %v16_v26  }
  0x78   :  { %19 = vst.msk [vmem:[#allocation0] ss:$8 sm:$0xf0] %vm17_vm2, %v16_v26  }
  0x7e   :  { %v27_v28 = vpop.permute.xlu0 %26   ;;  %v49_v29 = vpop.permute.xlu1 %48  }
  0x7f   :  { %29 = vst.msk [vmem:[#allocation0] ss:$8 sm:$0xf] %vm28_vm3, %v27_v28  }
  0x80   :  { %30 = vst.msk [vmem:[#allocation0] ss:$8 sm:$0xf0] %vm28_vm3, %v27_v28  }
  0x81   :  { %40 = vst.msk [vmem:[#allocation0] ss:$8 sm:$0xf] %vm39_vm4, %v38_v27  }
  0x82   :  { %41 = vst.msk [vmem:[#allocation0] ss:$8 sm:$0xf0] %vm39_vm4, %v38_v27  }
  0x83   :  { %51 = vst.msk [vmem:[#allocation0] ss:$8 sm:$0xf] %vm50_vm5, %v49_v29  }
  0x84   :  { %52 = vst.msk [vmem:[#allocation0] ss:$8 sm:$0xf0] %vm50_vm5, %v49_v29  }
  0x85   :  { %62 = vst.msk [vmem:[#allocation0] ss:$8 sm:$0xf] %vm61_vm6, %v60_v24  }
  0x86   :  { %63 = vst.msk [vmem:[#allocation0] ss:$8 sm:$0xf0] %vm61_vm6, %v60_v24   ;;  %v82_v30 = vpop.permute.xlu0 %81  }
  0x87   :  { %73 = vst.msk [vmem:[#allocation0] ss:$8 sm:$0xf] %vm72_vm7, %v71_v25  }
  0x88   :  { %74 = vst.msk [vmem:[#allocation0] ss:$8 sm:$0xf0] %vm72_vm7, %v71_v25  }
  0x89   :  { %84 = vst.msk [vmem:[#allocation0] ss:$8 sm:$0xf] %vm83_vm8, %v82_v30  }
  0x8a   :  { %85 = vst.msk [vmem:[#allocation0] ss:$8 sm:$0xf0] %vm83_vm8, %v82_v30  }
  0x90   :  { %v88_v31 = vld [vmem:[#allocation0] sm:$0x1]  ;;  %v93_v32 = vld [vmem:[#allocation0 + $0x8] sm:$0x1]  ;;  %v99_v33 = vld [vmem:[#allocation0 + $0x10] sm:$0x1] }
  0x91   :  { %91 = vst [vmem:[%s260_s1] sm:$0x1] %v88_v31  ;;  %v105_v34 = vld [vmem:[#allocation0 + $0x18] sm:$0x1]  ;;  %v111_v35 = vld [vmem:[#allocation0 + $0x20] sm:$0x1] }
  0x92   :  { %148 = vst [vmem:[%s260_s1 + $0x1] sm:$0x1] %v93_v32  ;;  %v117_v36 = vld [vmem:[#allocation0 + $0x28] sm:$0x1]  ;;  %v123_v37 = vld [vmem:[#allocation0 + $0x30] sm:$0x1] }
  0x93   :  { %149 = vst [vmem:[%s260_s1 + $0x2] sm:$0x1] %v99_v33  ;;  %v129_v38 = vld [vmem:[#allocation0 + $0x38] sm:$0x1] }
  0x94   :  { %150 = vst [vmem:[%s260_s1 + $0x3] sm:$0x1] %v105_v34 }
  0x95   :  { %151 = vst [vmem:[%s260_s1 + $0x4] sm:$0x1] %v111_v35 }
  0x96   :  { %152 = vst [vmem:[%s260_s1 + $0x5] sm:$0x1] %v117_v36 }
  0x97   :  { %153 = vst [vmem:[%s260_s1 + $0x6] sm:$0x1] %v123_v37 }
  0x98   :  { %154 = vst [vmem:[%s260_s1 + $0x7] sm:$0x1] %v129_v38 }

// kernel: tile.8
= control target key start
LH: loop header
LB: loop body
LE: loop exit
PB: predicated region body
PF: predicated region fallthrough
CT: control target
= control target key end

     0   :  { %s64_s0 = inlined_call_operand.vmem [shape: f32[16], index: 0, kind: input, shape index: {}]   ;;  %s65_s1 = inlined_call_operand.vmem [shape: f32[64,16], index: 1, kind: output, shape index: {}]  }
   0x1   :  { %v4_v0 = vld [vmem:[%s64_s0] ss:$0 sm:$0xff] }
   0x2   :  { %5 = vst [vmem:[%s65_s1] sm:$0xff] %v4_v0 }
   0x3   :  { %20 = vst [vmem:[%s65_s1 + $0x8] sm:$0xff] %v4_v0 }
   0x4   :  { %21 = vst [vmem:[%s65_s1 + $0x10] sm:$0xff] %v4_v0 }
   0x5   :  { %22 = vst [vmem:[%s65_s1 + $0x18] sm:$0xff] %v4_v0 }
   0x6   :  { %23 = vst [vmem:[%s65_s1 + $0x20] sm:$0xff] %v4_v0 }
   0x7   :  { %24 = vst [vmem:[%s65_s1 + $0x28] sm:$0xff] %v4_v0 }
   0x8   :  { %25 = vst [vmem:[%s65_s1 + $0x30] sm:$0xff] %v4_v0 }
   0x9   :  { %26 = vst [vmem:[%s65_s1 + $0x38] sm:$0xff] %v4_v0 }

// kernel: scale_layer.1
= control target key start
LH: loop header
LB: loop body
LE: loop exit
PB: predicated region body
PF: predicated region fallthrough
CT: control target
= control target key end

     0   :  { %vm29_vm0 = vcmask 1041408   ;;  %vm31_vm1 = vcmask 1045508   ;;  %vm33_vm2 = vcmask 1043456   ;;  %s82_s1 = inlined_call_operand.vmem [shape: f32[1,1024], index: 1, kind: input, shape index: {}]   ;;  %s83_s0 = inlined_call_operand.vmem [shape: f32[2,1024], index: 0, kind: input, shape index: {}]   ;;  %s84_s2 = inlined_call_operand.vmem [shape: f32[2,1024], index: 2, kind: output, shape index: {}]  }
   0x1   :  { %v13_v0 = vld [vmem:[%s82_s1] sm:$0xff]  ;;  %v12_v18 = vld [vmem:[%s83_s0 + $0x8] sm:$0xff] }
   0x2   :  { %v15_v1 = vperm.slane %v13_v0, 0  ;;  %v16_v2 = vperm.slane %v13_v0, 1  ;;  %v17_v3 = vperm.slane %v13_v0, 2  ;;  %v18_v4 = vperm.slane %v13_v0, 3  ;;  %v11_v12 = vld [vmem:[%s83_s0] sm:$0xff] }
   0x3   :  { %v19_v5 = vperm.slane %v13_v0, 4  ;;  %v20_v6 = vperm.slane %v13_v0, 5  ;;  %v21_v7 = vperm.slane %v13_v0, 6  ;;  %v22_v8 = vperm.slane %v13_v0, 7 }
   0x4   :  { %v23_v9 = vrot.slane %v16_v2, 6  ;;  %v24_v10 = vrot.slane %v17_v3, 4  ;;  %v25_v11 = vrot.slane %v18_v4, 2 }
   0x5   :  { %v26_v13 = vrot.slane %v20_v6, 6  ;;  %v27_v14 = vrot.slane %v21_v7, 4  ;;  %v28_v15 = vrot.slane %v22_v8, 2 }
   0x6   :  { %v30_v16 = vsel %vm29_vm0, %v15_v1, %v23_v9  ;;  %v32_v17 = vsel %vm31_vm1, %v24_v10, %v25_v11 }
   0x7   :  { %v34_v19 = vsel %vm33_vm2, %v30_v16, %v32_v17  ;;  %v35_v20 = vsel %vm29_vm0, %v19_v5, %v26_v13  ;;  %v36_v21 = vsel %vm31_vm1, %v27_v14, %v28_v15 }
   0x8   :  { %v40_v22 = vmul.f32 %v34_v19, %v11_v12  ;;  %v37_v23 = vsel %vm33_vm2, %v35_v20, %v36_v21 }
   0x9   :  { %v41_v24 = vmul.f32 %v37_v23, %v12_v18 }
   0xa   :  { %42 = vst [vmem:[%s84_s2] sm:$0xff] %v40_v22 }
   0xb   :  { %43 = vst [vmem:[%s84_s2 + $0x8] sm:$0xff] %v41_v24 }

</bundles_post_ra>
